<compile_context>
chip_gen: v6e
topology: v6e:2x2x1
jax: 0.10.0
libtpu: 0.0.40
codegen_flags: <defaults>
</compile_context>

<pallas_src>
import functools

import jax
import jax.numpy as jnp
import numpy as np
from jax.experimental import pallas as pl
from jax.experimental.pallas import tpu as pltpu


# ---------------------------------------------------------------------------
# Generation-aware VMEM budgets
# ---------------------------------------------------------------------------
def _tpu_vmem_capacity_bytes():
    try:
        return int(pltpu.get_tpu_info().vmem_capacity_bytes)
    except Exception:
        return 64 << 20  # conservative default == v7x per-TensorCore VMEM


_VMEM_CAP_BYTES = _tpu_vmem_capacity_bytes()
# 2 inputs + 1 output, double-buffered -> ~6 blocks resident; keep ~3/8 of VMEM free.
_BUF_BUDGET_BYTES = max(512 << 10, min(8 << 20, (_VMEM_CAP_BYTES * 5 // 8) // 6))
_VMEM_LIMIT_BYTES = max(16 << 20,
                        min(_VMEM_CAP_BYTES - (8 << 20), 6 * _BUF_BUDGET_BYTES + (8 << 20)))


def _vmem_limit(*block_bytes):
    """Per-call scoped-VMEM limit: double-buffered blocks + headroom, capped below capacity."""
    need = 2 * sum(int(b) for b in block_bytes) + (4 << 20)
    limit = max(_VMEM_LIMIT_BYTES, need)
    return int(max(16 << 20, min(_VMEM_CAP_BYTES - (4 << 20), limit)))


# ---------------------------------------------------------------------------
# Kernels (pure lane-aligned elementwise; f32 opmath for reduced-precision inputs)
# ---------------------------------------------------------------------------
def _swiglu_split_kernel(out_ref, gate_ref, o_ref):
    gate = gate_ref[...].astype(jnp.float32)
    silu = gate * jax.nn.sigmoid(gate)
    o_ref[...] = (out_ref[...].astype(jnp.float32) * silu).astype(o_ref.dtype)


def _swiglu_fused_kernel(x_ref, o_ref):
    # Fallback: x_ref is a (tm, 2H) row slab; slice the halves on the lane axis.
    h = o_ref.shape[-1]
    out = x_ref[:, :h].astype(jnp.float32)
    gate = x_ref[:, h:].astype(jnp.float32)
    o_ref[...] = (out * (gate * jax.nn.sigmoid(gate))).astype(o_ref.dtype)


# ---------------------------------------------------------------------------
# Tile selection helpers (all trace-time Python ints)
# ---------------------------------------------------------------------------
def _sublane_multiple(itemsize):
    # f32 -> 8, bf16 -> 16, int8/fp8 -> 32 (rows per packed (., 128) tile).
    return 8 * max(1, 4 // int(itemsize))


def _round_down(x, m):
    return max(m, (int(x) // m) * m)


def _row_tile(m, lane, itemsize, budget=_BUF_BUDGET_BYTES):
    """Largest sublane-aligned row count whose single block fits the per-buffer budget."""
    sub = _sublane_multiple(itemsize)
    rows = max(sub, int(budget) // max(1, lane * itemsize))
    rows = _round_down(rows, sub)          # budget-derived; no hard row cap
    return m if m <= rows else rows        # full extent is always layout-legal


def _half_lane_tile(h, itemsize, budget=_BUF_BUDGET_BYTES):
    """Largest multiple-of-128 divisor of h (prefer tn == h) such that a minimal-height
    block still fits the per-buffer budget.  None if h is not a multiple of 128."""
    if h % 128 != 0:
        return None
    sub = _sublane_multiple(itemsize)
    best = 128
    t = 128
    while t <= h:
        if h % t == 0 and sub * t * itemsize <= budget:
            best = t
        t += 128
    return best


def _rows_for_two_blocks(m, sub):
    """Row tile giving >= 2 row blocks (feed both v7x TensorCores), or None if impossible."""
    if m <= sub:
        return None
    half = m // 2
    return _round_down(half, sub) if half >= sub else sub


# ---------------------------------------------------------------------------
# pallas_call wrappers
# ---------------------------------------------------------------------------
def _swiglu_lastdim(x2d, h):
    """x2d: (M, 2H); split along the lane axis."""
    m, c = x2d.shape
    itemsize = jnp.dtype(x2d.dtype).itemsize
    sub = _sublane_multiple(itemsize)
    tn = _half_lane_tile(h, itemsize)

    if tn is not None:
        # Split via BlockSpecs: pass x2d twice; in_specs point at the two column halves.
        tm = _row_tile(m, tn, itemsize)
        if pl.cdiv(m, tm) * (h // tn) == 1:          # ensure >= 2 blocks for v7x megacore
            alt = _rows_for_two_blocks(m, sub)
            if alt is not None:
                tm = alt
            elif tn >= 256:
                tn = h // 2 if (h // 2) % 128 == 0 else 128
        gate_off = h // tn
        grid = (pl.cdiv(m, tm), h // tn)
        blk = tm * tn * itemsize
        return pl.pallas_call(
            _swiglu_split_kernel,
            out_shape=jax.ShapeDtypeStruct((m, h), x2d.dtype),
            grid=grid,
            in_specs=[
                pl.BlockSpec((tm, tn), lambda i, j: (i, j)),
                pl.BlockSpec((tm, tn), lambda i, j: (i, j + gate_off)),
            ],
            out_specs=pl.BlockSpec((tm, tn), lambda i, j: (i, j)),
            compiler_params=pltpu.CompilerParams(
                dimension_semantics=("parallel",) * len(grid),
                vmem_limit_bytes=_vmem_limit(blk, blk, blk),
            ),
        )(x2d, x2d)

    # Fallback: H not a multiple of 128 -> one (tm, 2H) row slab per step, in-kernel slice.
    # TODO(synk): for large H with H % 128 != 0 this pays XLU lane-shifts + masked stores;
    #             pad H to a multiple of 128 upstream if this path ever gets hot.
    tm = _row_tile(m, c, itemsize)
    if pl.cdiv(m, tm) == 1:
        alt = _rows_for_two_blocks(m, sub)
        if alt is not None:
            tm = alt
    grid = (pl.cdiv(m, tm),)
    return pl.pallas_call(
        _swiglu_fused_kernel,
        out_shape=jax.ShapeDtypeStruct((m, h), x2d.dtype),
        grid=grid,
        in_specs=[pl.BlockSpec((tm, c), lambda i: (i, 0))],
        out_specs=pl.BlockSpec((tm, h), lambda i: (i, 0)),
        compiler_params=pltpu.CompilerParams(
            dimension_semantics=("parallel",) * len(grid),
            vmem_limit_bytes=_vmem_limit(tm * c * itemsize, tm * h * itemsize),
        ),
    )(x2d)


def _swiglu_contig_halves(x3, b, r):
    """x3: (2*B, R, 128).  Batch i's out / gate halves are rows (2i, :, :) / (2i+1, :, :);
    each half is one fully contiguous slab in HBM, so every block is a single contiguous
    DMA and every store is an unmasked, lane-dense 128-wide write."""
    itemsize = jnp.dtype(x3.dtype).itemsize
    sub = _sublane_multiple(itemsize)
    tr = _row_tile(r, 128, itemsize)
    if b * pl.cdiv(r, tr) == 1:                      # ensure >= 2 blocks for v7x megacore
        alt = _rows_for_two_blocks(r, sub)
        if alt is not None:
            tr = alt
    grid = (b, pl.cdiv(r, tr))
    blk = tr * 128 * itemsize
    return pl.pallas_call(
        _swiglu_split_kernel,
        out_shape=jax.ShapeDtypeStruct((b, r, 128), x3.dtype),
        grid=grid,
        in_specs=[
            pl.BlockSpec((1, tr, 128), lambda i, j: (2 * i, j, 0)),
            pl.BlockSpec((1, tr, 128), lambda i, j: (2 * i + 1, j, 0)),
        ],
        out_specs=pl.BlockSpec((1, tr, 128), lambda i, j: (i, j, 0)),
        compiler_params=pltpu.CompilerParams(
            dimension_semantics=("parallel",) * len(grid),
            vmem_limit_bytes=_vmem_limit(blk, blk, blk),
        ),
    )(x3, x3)


# ---------------------------------------------------------------------------
# Public entry point (== SwiGLULayer(dim).forward)
# ---------------------------------------------------------------------------
@functools.partial(jax.jit, static_argnames=("dim",))
def swiglu(x, dim):
    ndim = x.ndim
    d = dim % ndim
    c = x.shape[d]
    assert c % 2 == 0, "split axis must have even size"
    h = c // 2

    if d == ndim - 1:
        lead = x.shape[:-1]
        m = int(np.prod(lead)) if lead else 1
        out2d = _swiglu_lastdim(x.reshape(m, c), h)
        return out2d.reshape(*lead, h)

    lead = x.shape[:d]
    trail = x.shape[d + 1:]
    b = int(np.prod(lead)) if lead else 1
    k = h * (int(np.prod(trail)) if trail else 1)

    if k % 128 == 0:
        # Lane-dense contiguous-half path: free reshape, no transposes, no masked stores.
        r = k // 128
        out3 = _swiglu_contig_halves(x.reshape(b * 2, r, 128), b, r)
        return out3.reshape(*lead, h, *trail)

    # TODO(synk): K = H*prod(trailing) not a multiple of 128 — rare; falls back to a
    #             moveaxis + last-dim split (pays one transpose each way).
    x_cl = jnp.moveaxis(x, d, -1)
    lead2 = x_cl.shape[:-1]
    m = int(np.prod(lead2)) if lead2 else 1
    out2d = _swiglu_lastdim(x_cl.reshape(m, c), h)
    return jnp.moveaxis(out2d.reshape(*lead2, h), -1, d)


def _swiglu_ref(x, dim):
    out, gate = jnp.split(x, 2, axis=dim)
    return out * (gate * jax.nn.sigmoid(gate))


if __name__ == "__main__":
    key = jax.random.PRNGKey(0)
    k1, k2, k3, k4, k5 = jax.random.split(key, 5)

    # Case 1: channel split (dim=1), conv-style (B, C, L) — lane-dense contiguous-half path.
    x1 = jax.random.normal(k1, (2, 64, 16), dtype=jnp.float32)
    y1 = jax.block_until_ready(swiglu(x1, dim=1))
    assert y1.shape == (2, 32, 16), y1.shape
    np.testing.assert_allclose(np.asarray(y1), np.asarray(_swiglu_ref(x1, dim=1)),
                               rtol=1e-5, atol=1e-5)

    # Case 2: last-dim split with small unaligned H — fused slab fallback.
    x2 = jax.random.normal(k2, (2, 8, 64), dtype=jnp.float32)
    y2 = jax.block_until_ready(swiglu(x2, dim=-1))
    assert y2.shape == (2, 8, 32), y2.shape
    np.testing.assert_allclose(np.asarray(y2), np.asarray(_swiglu_ref(x2, dim=-1)),
                               rtol=1e-5, atol=1e-5)

    # Case 3: last-dim split with lane-aligned H — BlockSpec half-split path.
    x3 = jax.random.normal(k3, (4, 8, 256), dtype=jnp.float32)
    y3 = jax.block_until_ready(swiglu(x3, dim=-1))
    assert y3.shape == (4, 8, 128), y3.shape
    np.testing.assert_allclose(np.asarray(y3), np.asarray(_swiglu_ref(x3, dim=-1)),
                               rtol=1e-5, atol=1e-5)

    # Case 4: bf16 channel split — lane-dense path with f32 opmath inside the kernel.
    x4 = jax.random.normal(k4, (2, 16, 128), dtype=jnp.bfloat16)
    y4 = jax.block_until_ready(swiglu(x4, dim=1))
    assert y4.shape == (2, 8, 128), y4.shape
    ref4 = _swiglu_ref(x4.astype(jnp.float32), dim=1)
    np.testing.assert_allclose(np.asarray(y4, dtype=np.float32), np.asarray(ref4),
                               rtol=1e-2, atol=1e-2)

    # Case 5: channel split where H*trailing is not a multiple of 128 — moveaxis fallback.
    x5 = jax.random.normal(k5, (2, 8, 10), dtype=jnp.float32)
    y5 = jax.block_until_ready(swiglu(x5, dim=1))
    assert y5.shape == (2, 4, 10), y5.shape
    np.testing.assert_allclose(np.asarray(y5), np.asarray(_swiglu_ref(x5, dim=1)),
                               rtol=1e-5, atol=1e-5)

    print("KERNEL_OK")
</pallas_src>

<mosaic_0001>
module attributes {stable_mosaic.version = 11 : i64} {
  func.func @_swiglu_split_kernel(%arg0: i32, %arg1: i32, %arg2: memref<1x4x128xf32, #tpu.memory_space<vmem>>, %arg3: memref<1x4x128xf32, #tpu.memory_space<vmem>>, %arg4: memref<1x4x128xf32, #tpu.memory_space<vmem>>) attributes {dimension_semantics = [#tpu.dimension_semantics<parallel>, #tpu.dimension_semantics<parallel>], iteration_bounds = array<i64: 2, 1>, scalar_prefetch = 0 : i64, scratch_operands = 0 : i64, tpu.core_type = #tpu.core_type<tc>, window_params = [{transform_indices = @transform_0, window_bounds = array<i64: 1, 4, 128>}, {transform_indices = @transform_1, window_bounds = array<i64: 1, 4, 128>}, {transform_indices = @transform_2, window_bounds = array<i64: 1, 4, 128>}]} {
    %c0 = arith.constant 0 : index
    %c0_0 = arith.constant 0 : index
    %c0_1 = arith.constant 0 : index
    %0 = vector.load %arg3[%c0, %c0_0, %c0_1] : memref<1x4x128xf32, #tpu.memory_space<vmem>>, vector<1x4x128xf32>
    %1 = arith.negf %0 : vector<1x4x128xf32>
    %2 = math.exp %1 : vector<1x4x128xf32>
    %cst = arith.constant 1.000000e+00 : f32
    %3 = vector.broadcast %cst : f32 to vector<1x4x128xf32>
    %4 = arith.addf %3, %2 : vector<1x4x128xf32>
    %5 = arith.divf %3, %4 : vector<1x4x128xf32>
    %6 = arith.mulf %0, %5 : vector<1x4x128xf32>
    %c0_2 = arith.constant 0 : index
    %c0_3 = arith.constant 0 : index
    %c0_4 = arith.constant 0 : index
    %7 = vector.load %arg2[%c0_2, %c0_3, %c0_4] : memref<1x4x128xf32, #tpu.memory_space<vmem>>, vector<1x4x128xf32>
    %8 = arith.mulf %7, %6 : vector<1x4x128xf32>
    %c0_5 = arith.constant 0 : index
    %c0_6 = arith.constant 0 : index
    %c0_7 = arith.constant 0 : index
    %9 = vector.load %arg4[%c0_5, %c0_6, %c0_7] : memref<1x4x128xf32, #tpu.memory_space<vmem>>, vector<1x4x128xf32>
    tpu.vector_store %arg4[%c0_5, %c0_6, %c0_7], %8 {strides = array<i32>} : memref<1x4x128xf32, #tpu.memory_space<vmem>>, vector<1x4x128xf32>,
    return
  }
  func.func @transform_0(%arg0: i32, %arg1: i32) -> (i32, i32, i32) {
    %c2_i32 = arith.constant 2 : i32
    %0 = arith.muli %c2_i32, %arg0 : i32
    %c0_i32 = arith.constant 0 : i32
    %c0_i32_0 = arith.constant 0 : i32
    return %0, %arg1, %c0_i32 : i32, i32, i32
  }
  func.func @transform_1(%arg0: i32, %arg1: i32) -> (i32, i32, i32) {
    %c2_i32 = arith.constant 2 : i32
    %0 = arith.muli %c2_i32, %arg0 : i32
    %c1_i32 = arith.constant 1 : i32
    %1 = arith.addi %0, %c1_i32 : i32
    %c0_i32 = arith.constant 0 : i32
    %c0_i32_0 = arith.constant 0 : i32
    return %1, %arg1, %c0_i32 : i32, i32, i32
  }
  func.func @transform_2(%arg0: i32, %arg1: i32) -> (i32, i32, i32) {
    %c0_i32 = arith.constant 0 : i32
    %c0_i32_0 = arith.constant 0 : i32
    return %arg0, %arg1, %c0_i32 : i32, i32, i32
  }
}

</mosaic_0001>

<bundles_post_ra>
// kernel: swiglu.1
= control target key start
LH: loop header
LB: loop body
LE: loop exit
PB: predicated region body
PF: predicated region fallthrough
CT: control target
= control target key end

     0   :  { %s403_s9 = smov 0   ;;  %s405_s10 = smov 0   ;;  %s439_s0 = inlined_call_operand.vmem [shape: f32[4,4,128], index: 0, kind: input, shape index: {}, may-alias: {0,1}]   ;;  %s440_s1 = inlined_call_operand.vmem [shape: f32[4,4,128], index: 1, kind: input, shape index: {}, may-alias: {0,1}]   ;;  %s441_s2 = inlined_call_operand.vmem [shape: f32[2,4,128], index: 2, kind: output, shape index: {}]  }
   0x1   :  { %s407_s11 = smov 0  }
   0x2 LB: > { %s24_s12 = sadd.s32 1, %s382_s10  ;;  %p327_p0 = scmp.ge.s32.totalorder %s386_s11, 1  ;;  %s386_s11 = sphi %s407_s11, %s12_s11   ;;  %s382_s10 = sphi %s405_s10, %s443_s10   ;;  %s378_s9 = sphi %s403_s9, %s442_s9  }
   0x3   : > { %p26_p1 = scmp.ge.s32.totalorder %s24_s12, 2  ;;  %p156_p2 = scmp.lt.s32.totalorder %s386_s11, 3 }
   0x5   : > { %s445_s12 = smov (%p26_p1, %s24_s12), 0  ;;  %p157_p3 = pnand %p327_p0, %p156_p2 }
   0x6   : > { %s328_s13 = sshll.u32 (!%p157_p3), %s378_s9, 1  ;;  %p212_p6 = scmp.lt.s32.totalorder (!%p157_p3), %s378_s9, 1 }
   0x7   : > { %160 = sbr.rel (%p157_p3) target bundleno = 53 (0x35), region = 28  ;;  %s202_s14 = sadd.s32 (!%p157_p3), 1, %s328_s13 }
   0x8   : > { %p203_p4 = scmp.lt.s32.totalorder (!%p157_p3), %s202_s14, 3  ;;  %p193_p5 = scmp.lt.s32.totalorder (!%p157_p3), %s328_s13, 3 }
   0xc   : > { %s447_s14 = smov (!%p203_p4, %s202_s14), 3  ;;  %s449_s13 = smov (!%p193_p5, %s328_s13), 3 }
   0xd   : > { %s331_s15 = sshll.u32 %s447_s14, 2  ;;  %s329_s19 = sshll.u32 %s449_s13, 2 }
   0xe   : > { %s209_s18 = scalar_lea.vmem %s440_s1, %s331_s15  ;;  %s451_s9 = smov (!%p212_p6, %s378_s9), 1 }
   0xf   : > { %v219_v0 = vld [vmem:[%s209_s18] sm:$0xf]  ;;  %s199_s22 = scalar_lea.vmem %s439_s0, %s329_s19  ;;  %s332_s23 = sshll.u32 %s451_s9, 2 }
  0x10   : > { %v333_v1 = vmul.f32 -1.442695, %v219_v0  ;;  %v227_v5 = vld [vmem:[%s199_s22] sm:$0xf]  ;;  %s218_s26 = scalar_lea.vmem %s441_s2, %s332_s23 }
  0x12   : > { %360 = vpow2.f32 %v333_v1 }
  0x1f   : > { %v361_v2 = vpop.eup %360 }
  0x20   : > { %v223_v3 = vadd.f32 1.0, %v361_v2 }
  0x22   : > { %362 = vrcp.f32 %v223_v3 }
  0x2f   : > { %v363_v4 = vpop.eup %362 }
  0x30   : > { %v226_v6 = vmul.f32 %v363_v4, %v219_v0 }
  0x32   : > { %v228_v7 = vmul.f32 %v227_v5, %v226_v6 }
  0x34   : > { %229 = vst [vmem:[%s218_s26] sm:$0xf] %v228_v7 }
  0x35 PF: > { %s12_s11 = sadd.s32 1, %s386_s11   ;;  %s442_s9 = smov %s382_s10 }
  0x36   : > { %p9_p7 = scmp.ge.s32.totalorder %s12_s11, 4   ;;  %s443_s10 = smov %s445_s12 }
  0x38   :  { %11 = sbr.rel (!%p9_p7) target bundleno = 2 (0x2), region = 61 }

</bundles_post_ra>
